<compile_context>
chip_gen: v7x
topology: tpu7x:2x2x1
jax: 0.10.0
libtpu: 0.0.40
codegen_flags: <defaults>
</compile_context>

<pallas_src>
import jax
import jax.numpy as jnp
from jax.experimental import pallas as pl
from jax.experimental.pallas import tpu as pltpu

# ---------------- configuration (small synthetic sizes) ----------------
B, N = 2, 16                # batch, max sequence length
BN = B * N
EMB_DIM, POS_DIM = 24, 8    # word / POS embedding dims
IN_DIM = EMB_DIM + POS_DIM  # 32 (non-tacred: no NER embedding)
HIDDEN = 32                 # opt['hidden_dim'] == mem_dim
NUM_LAYERS = 2              # opt['num_layers']
NUM_CLASS = 5               # opt['num_class']
VOCAB = 50
NUM_POS = 10
INF = 1e12                  # constant.INFINITY_NUMBER in the original repo

LANE = 128                  # TPU lane width — pad all feature/output dims to this
DP = LANE                   # padded input-feature dim
HP = LANE                   # padded hidden dim
CP = LANE                   # padded num_class dim
assert IN_DIM <= DP and HIDDEN <= HP and NUM_CLASS <= CP

# Flip to jnp.bfloat16 on v6e/v7x at production sizes (keep f32 accumulation).
MATMUL_DTYPE = jnp.float32


def _mm(a, b):
    return jnp.dot(a.astype(MATMUL_DTYPE), b.astype(MATMUL_DTYPE),
                   preferred_element_type=jnp.float32)


# ---------------- the single fused Pallas kernel ----------------
def fused_gcn_kernel(x_ref, aeff_ref, negmask_ref, biaseff_ref,
                     ws_ref, mlp_w_ref, mlp_b_ref, cls_w_ref, cls_b_ref,
                     out_ref):
    # x_ref:(BN,DP)  aeff_ref:(BN,BN)  negmask_ref:(3,B,N,HP)  biaseff_ref:(L,BN,HP)
    # ws_ref:(L,DP,HP)  mlp_w_ref:(3*HP,HP)  mlp_b_ref:(1,HP)
    # cls_w_ref:(HP,CP) cls_b_ref:(1,CP)  out_ref:(2,B,LANE)

    # --- GCN layers: h = relu((A_eff @ h) @ W[l] + bias_eff[l]) ---
    # A_eff = (A + I) / denom and bias_eff = 2*b / denom are pre-folded in the wrapper,
    # so inv_denom / the '+h' self-term never touch the VPU here.
    h = x_ref[...]                                # (BN, DP)
    a_eff = aeff_ref[...]                         # (BN, BN) block-diagonal over batch
    for l in range(NUM_LAYERS):
        ah = _mm(a_eff, h)                        # (BN, DP)
        h = jnp.maximum(_mm(ah, ws_ref[l]) + biaseff_ref[l], 0.0)

    # --- masked max pooling (sentence / subj / obj): additive lane-dense -INF masks ---
    h3 = h.reshape(B, N, HP)
    h_out = jnp.max(h3 + negmask_ref[0], axis=1)  # (B, HP)
    s_out = jnp.max(h3 + negmask_ref[1], axis=1)
    o_out = jnp.max(h3 + negmask_ref[2], axis=1)

    # --- out_mlp: single fused Linear(3H -> H) + ReLU, then classifier ---
    pooled = jnp.concatenate([h_out, s_out, o_out], axis=1)          # (B, 3*HP)
    hid = jnp.maximum(_mm(pooled, mlp_w_ref[...]) + mlp_b_ref[...], 0.0)
    logits = _mm(hid, cls_w_ref[...]) + cls_b_ref[...]               # (B, CP)

    # --- single packed, lane-dense output slab ---
    out_ref[0] = logits
    out_ref[1] = h_out


def fused_forward(x_flat, a_flat, negmask, bias_eff, pw):
    vmem = lambda: pl.BlockSpec(memory_space=pltpu.MemorySpace.VMEM)
    return pl.pallas_call(
        fused_gcn_kernel,
        out_shape=jax.ShapeDtypeStruct((2, B, LANE), jnp.float32),
        in_specs=[vmem() for _ in range(9)],
        out_specs=vmem(),
        compiler_params=pltpu.CompilerParams(vmem_limit_bytes=32 * 1024 * 1024),
    )(x_flat, a_flat, negmask, bias_eff,
      pw["gcn_w"], pw["mlp_w"], pw["mlp_b"], pw["cls_w"], pw["cls_b"])


# ---------------- glue (plain JAX) ----------------
def build_adj(head, masks):
    # Replaces head_to_tree/tree_to_adj(directed=False, self_loop=True) for prune_k=-1.
    # TODO(synk): the original builds pruned dependency trees on CPU; here we build the
    # full undirected tree adjacency directly from `head`.
    Bx, Nx = head.shape
    valid = (masks == 0)
    has_parent = (head > 0) & valid
    parent_idx = jnp.clip(head - 1, 0, Nx - 1)
    adj_dir = jax.nn.one_hot(parent_idx, Nx, dtype=jnp.float32) * has_parent[..., None]
    adj = adj_dir + jnp.swapaxes(adj_dir, 1, 2)
    adj = adj + jnp.eye(Nx, dtype=jnp.float32)[None] * valid[..., None].astype(jnp.float32)
    return adj


def _pad2(a, rows, cols):
    r, c = a.shape
    return jnp.pad(a, ((0, rows - r), (0, cols - c)))


def pad_params(params):
    # Lane-pad all static weights/biases to 128-wide slabs.
    gcn_w = jnp.stack([_pad2(params["W"][l], DP, HP) for l in range(NUM_LAYERS)], axis=0)
    mlp_w3 = params["mlp_w"].reshape(3, HIDDEN, HIDDEN)
    mlp_w = jnp.pad(mlp_w3, ((0, 0), (0, HP - HIDDEN), (0, HP - HIDDEN))).reshape(3 * HP, HP)
    return {
        "gcn_w": gcn_w,                        # (L, DP, HP)
        "mlp_w": mlp_w,                        # (3*HP, HP)  (rows aligned to padded pooled cat)
        "mlp_b": _pad2(params["mlp_b"], 1, HP),
        "cls_w": _pad2(params["cls_w"], HP, CP),
        "cls_b": _pad2(params["cls_b"], 1, CP),
    }


def make_params(key):
    ks = jax.random.split(key, 12)
    u = lambda k, shape, a: jax.random.uniform(k, shape, jnp.float32, -a, a)
    params = {
        "emb": u(ks[0], (VOCAB, EMB_DIM), 1.0).at[0].set(0.0),   # padding_idx=0
        "pos_emb": u(ks[1], (NUM_POS, POS_DIM), 1.0),
        "W": [u(ks[2 + l], (IN_DIM if l == 0 else HIDDEN, HIDDEN), 0.1)
              for l in range(NUM_LAYERS)],
        "bW": [u(ks[4 + l], (1, HIDDEN), 0.1) for l in range(NUM_LAYERS)],
        "mlp_w": u(ks[6], (3 * HIDDEN, HIDDEN), 0.1),
        "mlp_b": u(ks[7], (1, HIDDEN), 0.1),
        "cls_w": u(ks[8], (HIDDEN, NUM_CLASS), 0.1),
        "cls_b": u(ks[9], (1, NUM_CLASS), 0.1),
    }
    return params, ks[10], ks[11]


def forward(params, words, masks, pos, head, subj_pos, obj_pos):
    # embeddings (eval mode: all dropouts are identity)
    word_embs = params["emb"][words]                    # (B,N,EMB_DIM)
    pos_embs = params["pos_emb"][pos]                   # (B,N,POS_DIM)
    x = jnp.concatenate([word_embs, pos_embs], axis=2)  # (B,N,IN_DIM)
    x_flat = jnp.pad(x, ((0, 0), (0, 0), (0, DP - IN_DIM))).reshape(BN, DP)

    adj = build_adj(head, masks)
    adj_matrix = (adj != 0).astype(jnp.float32)
    inv_denom = 1.0 / (adj_matrix.sum(2, keepdims=True) + 1.0)          # (B,N,1)

    # Fold inv_denom and the '+h' self-term into a block-diagonal effective adjacency.
    a_eff = inv_denom * (adj_matrix + jnp.eye(N, dtype=jnp.float32)[None])   # (B,N,N)
    a_flat = jnp.zeros((BN, BN), jnp.float32)
    for b in range(B):
        a_flat = jax.lax.dynamic_update_slice(a_flat, a_eff[b], (b * N, b * N))

    # bias_eff[l] = 2*b[l] / denom, lane-dense.
    inv_denom_flat = inv_denom.reshape(BN, 1)
    bias_eff = jnp.stack(
        [inv_denom_flat * _pad2(2.0 * params["bW"][l], 1, HP) for l in range(NUM_LAYERS)],
        axis=0)                                                          # (L, BN, HP)

    # Additive lane-dense pooling masks.
    pool_mask = ((adj_matrix.sum(2) + adj_matrix.sum(1)) == 0)
    subj_mask = (subj_pos != 0)
    obj_mask = (obj_pos != 0)
    masks3 = jnp.stack([pool_mask, subj_mask, obj_mask], axis=0)         # (3,B,N) bool
    negmask = jnp.broadcast_to(
        jnp.where(masks3, -INF, 0.0).astype(jnp.float32)[..., None], (3, B, N, HP))

    pw = pad_params(params)
    packed = fused_forward(x_flat, a_flat, negmask, bias_eff, pw)        # (2,B,LANE)
    return packed[0, :, :NUM_CLASS], packed[1, :, :HIDDEN]


def forward_reference(params, words, masks, pos, head, subj_pos, obj_pos):
    # pure-JAX reference mirroring the PyTorch semantics
    word_embs = params["emb"][words]
    pos_embs = params["pos_emb"][pos]
    h = jnp.concatenate([word_embs, pos_embs], axis=2)
    adj = build_adj(head, masks)
    adj_matrix = (adj != 0).astype(jnp.float32)
    denom = adj_matrix.sum(2, keepdims=True) + 1.0
    pool_mask = ((adj_matrix.sum(2) + adj_matrix.sum(1)) == 0)[..., None]
    for l in range(NUM_LAYERS):
        Ax = adj_matrix @ h
        AxW = (Ax @ params["W"][l] + params["bW"][l]) + (h @ params["W"][l] + params["bW"][l])
        h = jax.nn.relu(AxW / denom)

    def pool_max(hh, mask):
        return jnp.max(jnp.where(mask, -INF, hh), axis=1)

    h_out = pool_max(h, pool_mask)
    s_out = pool_max(h, (subj_pos != 0)[..., None])
    o_out = pool_max(h, (obj_pos != 0)[..., None])
    feats = jnp.concatenate([h_out, s_out, o_out], axis=1)
    hid = jax.nn.relu(feats @ params["mlp_w"] + params["mlp_b"])
    logits = hid @ params["cls_w"] + params["cls_b"]
    return logits, h_out


if __name__ == "__main__":
    params, kw, kp = make_params(jax.random.PRNGKey(0))

    # deterministic synthetic inputs
    lengths = jnp.array([N, 12], dtype=jnp.int32)
    idx = jnp.arange(N, dtype=jnp.int32)
    masks = (idx[None, :] >= lengths[:, None]).astype(jnp.int32)        # 1 == PAD
    words = jax.random.randint(kw, (B, N), 1, VOCAB, dtype=jnp.int32) * (1 - masks)
    pos = jax.random.randint(kp, (B, N), 0, NUM_POS, dtype=jnp.int32) * (1 - masks)
    head = jnp.where(idx[None, :] == 0, 0, idx[None, :]) * (1 - masks)  # chain tree
    subj_pos = jnp.broadcast_to(idx - 2, (B, N))                        # 0 at subject pos
    obj_pos = jnp.broadcast_to(idx - 5, (B, N))                         # 0 at object pos

    fwd = jax.jit(lambda w, m, p, h, s, o: forward(params, w, m, p, h, s, o))
    logits, pooling_output = fwd(words, masks, pos, head, subj_pos, obj_pos)
    jax.block_until_ready((logits, pooling_output))

    ref_logits, ref_pool = forward_reference(params, words, masks, pos, head, subj_pos, obj_pos)
    assert logits.shape == (B, NUM_CLASS) and pooling_output.shape == (B, HIDDEN)
    assert jnp.allclose(logits, ref_logits, atol=1e-4, rtol=1e-4)
    assert jnp.allclose(pooling_output, ref_pool, atol=1e-4, rtol=1e-4)
    print("KERNEL_OK")
</pallas_src>

<mosaic_0001>
module attributes {stable_mosaic.version = 11 : i64} {
  func.func @fused_gcn_kernel(%arg0: memref<32x128xf32, #tpu.memory_space<vmem>>, %arg1: memref<32x32xf32, #tpu.memory_space<vmem>>, %arg2: memref<3x2x16x128xf32, #tpu.memory_space<vmem>>, %arg3: memref<2x32x128xf32, #tpu.memory_space<vmem>>, %arg4: memref<2x128x128xf32, #tpu.memory_space<vmem>>, %arg5: memref<384x128xf32, #tpu.memory_space<vmem>>, %arg6: memref<1x128xf32, #tpu.memory_space<vmem>>, %arg7: memref<128x128xf32, #tpu.memory_space<vmem>>, %arg8: memref<1x128xf32, #tpu.memory_space<vmem>>, %arg9: memref<2x2x128xf32, #tpu.memory_space<vmem>>) attributes {dimension_semantics = [], scalar_prefetch = 0 : i64, scratch_operands = 0 : i64, tpu.core_type = #tpu.core_type<tc>} {
    %c0 = arith.constant 0 : index
    %c0_0 = arith.constant 0 : index
    %0 = vector.load %arg0[%c0, %c0_0] : memref<32x128xf32, #tpu.memory_space<vmem>>, vector<32x128xf32>
    %c0_1 = arith.constant 0 : index
    %c0_2 = arith.constant 0 : index
    %1 = vector.load %arg1[%c0_1, %c0_2] : memref<32x32xf32, #tpu.memory_space<vmem>>, vector<32x32xf32>
    %cst = arith.constant dense<0.000000e+00> : vector<32x128xf32>
    %2 = tpu.matmul %1, %0, %cst {dimension_numbers = #tpu.dot_dimension_numbers<[1], [0], [0], [1], [0, 0, 1, 1], [], []>} : vector<32x32xf32>, vector<32x128xf32>, vector<32x128xf32> -> vector<32x128xf32>
    %c0_3 = arith.constant 0 : index
    %c0_4 = arith.constant 0 : index
    %c0_5 = arith.constant 0 : index
    %3 = vector.load %arg4[%c0_3, %c0_4, %c0_5] : memref<2x128x128xf32, #tpu.memory_space<vmem>>, vector<1x128x128xf32>
    %4 = vector.shape_cast %3 : vector<1x128x128xf32> to vector<128x128xf32>
    %cst_6 = arith.constant dense<0.000000e+00> : vector<32x128xf32>
    %5 = tpu.matmul %2, %4, %cst_6 {dimension_numbers = #tpu.dot_dimension_numbers<[1], [0], [0], [1], [0, 0, 1, 1], [], []>} : vector<32x128xf32>, vector<128x128xf32>, vector<32x128xf32> -> vector<32x128xf32>
    %c0_7 = arith.constant 0 : index
    %c0_8 = arith.constant 0 : index
    %c0_9 = arith.constant 0 : index
    %6 = vector.load %arg3[%c0_7, %c0_8, %c0_9] : memref<2x32x128xf32, #tpu.memory_space<vmem>>, vector<1x32x128xf32>
    %7 = vector.shape_cast %6 : vector<1x32x128xf32> to vector<32x128xf32>
    %8 = arith.addf %5, %7 : vector<32x128xf32>
    %cst_10 = arith.constant 0.000000e+00 : f32
    %9 = vector.broadcast %cst_10 : f32 to vector<32x128xf32>
    %10 = arith.maximumf %8, %9 : vector<32x128xf32>
    %cst_11 = arith.constant dense<0.000000e+00> : vector<32x128xf32>
    %11 = tpu.matmul %1, %10, %cst_11 {dimension_numbers = #tpu.dot_dimension_numbers<[1], [0], [0], [1], [0, 0, 1, 1], [], []>} : vector<32x32xf32>, vector<32x128xf32>, vector<32x128xf32> -> vector<32x128xf32>
    %c1 = arith.constant 1 : index
    %c0_12 = arith.constant 0 : index
    %c0_13 = arith.constant 0 : index
    %12 = vector.load %arg4[%c1, %c0_12, %c0_13] : memref<2x128x128xf32, #tpu.memory_space<vmem>>, vector<1x128x128xf32>
    %13 = vector.shape_cast %12 : vector<1x128x128xf32> to vector<128x128xf32>
    %cst_14 = arith.constant dense<0.000000e+00> : vector<32x128xf32>
    %14 = tpu.matmul %11, %13, %cst_14 {dimension_numbers = #tpu.dot_dimension_numbers<[1], [0], [0], [1], [0, 0, 1, 1], [], []>} : vector<32x128xf32>, vector<128x128xf32>, vector<32x128xf32> -> vector<32x128xf32>
    %c1_15 = arith.constant 1 : index
    %c0_16 = arith.constant 0 : index
    %c0_17 = arith.constant 0 : index
    %15 = vector.load %arg3[%c1_15, %c0_16, %c0_17] : memref<2x32x128xf32, #tpu.memory_space<vmem>>, vector<1x32x128xf32>
    %16 = vector.shape_cast %15 : vector<1x32x128xf32> to vector<32x128xf32>
    %17 = arith.addf %14, %16 : vector<32x128xf32>
    %cst_18 = arith.constant 0.000000e+00 : f32
    %18 = vector.broadcast %cst_18 : f32 to vector<32x128xf32>
    %19 = arith.maximumf %17, %18 : vector<32x128xf32>
    %20 = vector.shape_cast %19 : vector<32x128xf32> to vector<2x16x128xf32>
    %c0_19 = arith.constant 0 : index
    %c0_20 = arith.constant 0 : index
    %c0_21 = arith.constant 0 : index
    %c0_22 = arith.constant 0 : index
    %21 = vector.load %arg2[%c0_19, %c0_20, %c0_21, %c0_22] : memref<3x2x16x128xf32, #tpu.memory_space<vmem>>, vector<1x2x16x128xf32>
    %22 = vector.shape_cast %21 : vector<1x2x16x128xf32> to vector<2x16x128xf32>
    %23 = arith.addf %20, %22 : vector<2x16x128xf32>
    %cst_23 = arith.constant dense<0xFF800000> : vector<2x128xf32>
    %24 = vector.multi_reduction <maximumf>, %23, %cst_23 [1] : vector<2x16x128xf32> to vector<2x128xf32>
    %c1_24 = arith.constant 1 : index
    %c0_25 = arith.constant 0 : index
    %c0_26 = arith.constant 0 : index
    %c0_27 = arith.constant 0 : index
    %25 = vector.load %arg2[%c1_24, %c0_25, %c0_26, %c0_27] : memref<3x2x16x128xf32, #tpu.memory_space<vmem>>, vector<1x2x16x128xf32>
    %26 = vector.shape_cast %25 : vector<1x2x16x128xf32> to vector<2x16x128xf32>
    %27 = arith.addf %20, %26 : vector<2x16x128xf32>
    %cst_28 = arith.constant dense<0xFF800000> : vector<2x128xf32>
    %28 = vector.multi_reduction <maximumf>, %27, %cst_28 [1] : vector<2x16x128xf32> to vector<2x128xf32>
    %c2 = arith.constant 2 : index
    %c0_29 = arith.constant 0 : index
    %c0_30 = arith.constant 0 : index
    %c0_31 = arith.constant 0 : index
    %29 = vector.load %arg2[%c2, %c0_29, %c0_30, %c0_31] : memref<3x2x16x128xf32, #tpu.memory_space<vmem>>, vector<1x2x16x128xf32>
    %30 = vector.shape_cast %29 : vector<1x2x16x128xf32> to vector<2x16x128xf32>
    %31 = arith.addf %20, %30 : vector<2x16x128xf32>
    %cst_32 = arith.constant dense<0xFF800000> : vector<2x128xf32>
    %32 = vector.multi_reduction <maximumf>, %31, %cst_32 [1] : vector<2x16x128xf32> to vector<2x128xf32>
    %33 = tpu.concatenate %24, %28, %32 in 1 : vector<2x128xf32>, vector<2x128xf32>, vector<2x128xf32> -> vector<2x384xf32>
    %c0_33 = arith.constant 0 : index
    %c0_34 = arith.constant 0 : index
    %34 = vector.load %arg5[%c0_33, %c0_34] : memref<384x128xf32, #tpu.memory_space<vmem>>, vector<384x128xf32>
    %cst_35 = arith.constant dense<0.000000e+00> : vector<2x128xf32>
    %35 = tpu.matmul %33, %34, %cst_35 {dimension_numbers = #tpu.dot_dimension_numbers<[1], [0], [0], [1], [0, 0, 1, 1], [], []>} : vector<2x384xf32>, vector<384x128xf32>, vector<2x128xf32> -> vector<2x128xf32>
    %c0_36 = arith.constant 0 : index
    %c0_37 = arith.constant 0 : index
    %36 = vector.load %arg6[%c0_36, %c0_37] : memref<1x128xf32, #tpu.memory_space<vmem>>, vector<1x128xf32>
    %37 = vector.broadcast %36 : vector<1x128xf32> to vector<2x128xf32>
    %38 = arith.addf %35, %37 : vector<2x128xf32>
    %cst_38 = arith.constant 0.000000e+00 : f32
    %39 = vector.broadcast %cst_38 : f32 to vector<2x128xf32>
    %40 = arith.maximumf %38, %39 : vector<2x128xf32>
    %c0_39 = arith.constant 0 : index
    %c0_40 = arith.constant 0 : index
    %41 = vector.load %arg7[%c0_39, %c0_40] : memref<128x128xf32, #tpu.memory_space<vmem>>, vector<128x128xf32>
    %cst_41 = arith.constant dense<0.000000e+00> : vector<2x128xf32>
    %42 = tpu.matmul %40, %41, %cst_41 {dimension_numbers = #tpu.dot_dimension_numbers<[1], [0], [0], [1], [0, 0, 1, 1], [], []>} : vector<2x128xf32>, vector<128x128xf32>, vector<2x128xf32> -> vector<2x128xf32>
    %c0_42 = arith.constant 0 : index
    %c0_43 = arith.constant 0 : index
    %43 = vector.load %arg8[%c0_42, %c0_43] : memref<1x128xf32, #tpu.memory_space<vmem>>, vector<1x128xf32>
    %44 = vector.broadcast %43 : vector<1x128xf32> to vector<2x128xf32>
    %45 = arith.addf %42, %44 : vector<2x128xf32>
    %c0_44 = arith.constant 0 : index
    %c0_45 = arith.constant 0 : index
    %c0_46 = arith.constant 0 : index
    %46 = vector.load %arg9[%c0_44, %c0_45, %c0_46] : memref<2x2x128xf32, #tpu.memory_space<vmem>>, vector<1x2x128xf32>
    %47 = vector.shape_cast %46 : vector<1x2x128xf32> to vector<2x128xf32>
    %48 = vector.shape_cast %45 : vector<2x128xf32> to vector<1x2x128xf32>
    tpu.vector_store %arg9[%c0_44, %c0_45, %c0_46], %48 {strides = array<i32>} : memref<2x2x128xf32, #tpu.memory_space<vmem>>, vector<1x2x128xf32>,
    %c1_47 = arith.constant 1 : index
    %c0_48 = arith.constant 0 : index
    %c0_49 = arith.constant 0 : index
    %49 = vector.load %arg9[%c1_47, %c0_48, %c0_49] : memref<2x2x128xf32, #tpu.memory_space<vmem>>, vector<1x2x128xf32>
    %50 = vector.shape_cast %49 : vector<1x2x128xf32> to vector<2x128xf32>
    %51 = vector.shape_cast %24 : vector<2x128xf32> to vector<1x2x128xf32>
    tpu.vector_store %arg9[%c1_47, %c0_48, %c0_49], %51 {strides = array<i32>} : memref<2x2x128xf32, #tpu.memory_space<vmem>>, vector<1x2x128xf32>,
    return
  }
}

</mosaic_0001>

<bundles_post_ra>
// kernel: _lambda_.1
= control target key start
LH: loop header
LB: loop body
LE: loop exit
PB: predicated region body
PF: predicated region fallthrough
CT: control target
= control target key end

     0   :  { %vm40_vm0 = vcmask 261120   ;;  %vm1322_vm1 = vmmov 0   ;;  %vm513_vm2 = vcmask 1041409   ;;  %s1798_s0 = inlined_call_operand.vmem [shape: f32[32,128], index: 0, kind: input, shape index: {}]   ;;  %s1799_s1 = inlined_call_operand.vmem [shape: f32[32,32], index: 1, kind: input, shape index: {}]   ;;  %s1800_s4 = inlined_call_operand.vmem [shape: f32[2,128,128], index: 4, kind: input, shape index: {}]   ;;  %s1801_s3 = inlined_call_operand.vmem [shape: f32[2,32,128], index: 3, kind: input, shape index: {}]   ;;  %s1802_s5 = inlined_call_operand.vmem [shape: f32[384,128], index: 5, kind: input, shape index: {}]   ;;  %s1803_s2 = inlined_call_operand.vmem [shape: f32[3,2,16,128], index: 2, kind: input, shape index: {}]   ;;  %s1804_s7 = inlined_call_operand.vmem [shape: f32[128,128], index: 7, kind: input, shape index: {}]   ;;  %s1805_s9 = inlined_call_operand.vmem [shape: f32[2,2,128], index: 9, kind: output, shape index: {}]   ;;  %s1806_s6 = inlined_call_operand.vmem [shape: f32[1,128], index: 6, kind: input, shape index: {}]   ;;  %s1807_s8 = inlined_call_operand.vmem [shape: f32[1,128], index: 8, kind: input, shape index: {}]  }
   0x1   :  { %v32_v0 = vld [vmem:[%s1798_s0] sm:$0xff]  ;;  %v33_v1 = vld [vmem:[%s1798_s0 + $0x8] sm:$0xff]  ;;  %v34_v2 = vld [vmem:[%s1798_s0 + $0x10] sm:$0xff] }
   0x2   :  { %v1158_v3 = vpack.c.bf16 %v33_v1, %v32_v0  ;;  %v35_v4 = vld [vmem:[%s1798_s0 + $0x18] sm:$0xff]  ;;  %v36_v5 = vld [vmem:[%s1799_s1] sm:$0xff]  ;;  %v139_v8 = vld [vmem:[%s1800_s4 + $0x8] sm:$0xff] }
   0x3   :  { %v1162_v6 = vpack.c.bf16 %v35_v4, %v34_v2  ;;  %992 = vmatprep.mubr.msk.f32.mxu0 %vm40_vm0, %v36_v5  ;;  %v138_v7 = vld [vmem:[%s1800_s4] sm:$0xff]  ;;  %v140_v9 = vld [vmem:[%s1800_s4 + $0x10] sm:$0xff]  ;;  %v141_v10 = vld [vmem:[%s1800_s4 + $0x18] sm:$0xff] }
   0x4   :  { %1159 = vmatprep.subr.bf16.mxu0 %v1158_v3  ;;  %v1166_v11 = vpack.c.bf16 %v139_v8, %v138_v7  ;;  %v1170_v12 = vpack.c.bf16 %v141_v10, %v140_v9  ;;  %v142_v13 = vld [vmem:[%s1800_s4 + $0x20] sm:$0xff]  ;;  %v143_v14 = vld [vmem:[%s1800_s4 + $0x28] sm:$0xff]  ;;  %v1416_v17 = vld [vmem:[%s1799_s1 + $0x10] sm:$0xff] }
   0x5   :  { %1161 = vmatpush3.bf16.msra.mxu0 %v1158_v3  ;;  %v1411_v15 = vld [vmem:[%s1799_s1 + $0x8] sm:$0xff]  ;;  %v1174_v16 = vpack.c.bf16 %v143_v14, %v142_v13  ;;  %v144_v18 = vld [vmem:[%s1800_s4 + $0x30] sm:$0xff]  ;;  %v145_v19 = vld [vmem:[%s1800_s4 + $0x38] sm:$0xff] }
   0x6   :  { %1163 = vmatprep.subr.bf16.mxu0 %v1162_v6  ;;  %1167 = vmatprep.subr.bf16.mxu1 %v1166_v11  ;;  %v1431_v20 = vld [vmem:[%s1799_s1 + $0x18] sm:$0xff]  ;;  %v1178_v21 = vpack.c.bf16 %v145_v19, %v144_v18  ;;  %v146_v22 = vld [vmem:[%s1800_s4 + $0x40] sm:$0xff]  ;;  %v147_v23 = vld [vmem:[%s1800_s4 + $0x48] sm:$0xff] }
   0x7   :  { %1169 = vmatpush3.bf16.msra.mxu1 %v1166_v11  ;;  %v1182_v24 = vpack.c.bf16 %v147_v23, %v146_v22  ;;  %v148_v25 = vld [vmem:[%s1800_s4 + $0x50] sm:$0xff]  ;;  %v149_v26 = vld [vmem:[%s1800_s4 + $0x58] sm:$0xff]  ;;  %v150_v28 = vld [vmem:[%s1800_s4 + $0x60] sm:$0xff] }
   0x8   :  { %1171 = vmatprep.subr.bf16.mxu1 %v1170_v12  ;;  %v1186_v27 = vpack.c.bf16 %v149_v26, %v148_v25  ;;  %v151_v29 = vld [vmem:[%s1800_s4 + $0x68] sm:$0xff]  ;;  %v152_v31 = vld [vmem:[%s1800_s4 + $0x70] sm:$0xff]  ;;  %v153_v32 = vld [vmem:[%s1800_s4 + $0x78] sm:$0xff] }
   0x9   :  { %1165 = vmatpush3.bf16.msra.mxu0 %v1162_v6  ;;  %v1190_v30 = vpack.c.bf16 %v151_v29, %v150_v28  ;;  %v1194_v33 = vpack.c.bf16 %v153_v32, %v152_v31  ;;  %v155_v38 = vld [vmem:[%s1801_s3 + $0x8] sm:$0xff]  ;;  %v154_v39 = vld [vmem:[%s1801_s3] sm:$0xff]  ;;  %v157_v44 = vld [vmem:[%s1801_s3 + $0x18] sm:$0xff] }
   0xa   :  { %v156_v46 = vld [vmem:[%s1801_s3 + $0x10] sm:$0xff]  ;;  %v828_v54 = vld [vmem:[%s1800_s4 + $0x80] sm:$0xff]  ;;  %v829_v55 = vld [vmem:[%s1800_s4 + $0x88] sm:$0xff] }
   0xb   :  { %1173 = vmatpush3.bf16.msra.mxu1 %v1170_v12  ;;  %v1206_v58 = vpack.c.bf16 %v829_v55, %v828_v54  ;;  %v830_v59 = vld [vmem:[%s1800_s4 + $0x90] sm:$0xff]  ;;  %v831_v60 = vld [vmem:[%s1800_s4 + $0x98] sm:$0xff]  ;;  %v832_v62 = vld [vmem:[%s1800_s4 + $0xa0] sm:$0xff] }
   0xc   :  { %993 = vmatmul.mubr.msk.f32.vlgmr.msra.gmra.mrb[0].mxu0 %vm40_vm0, %v1411_v15  ;;  %1175 = vmatprep.subr.bf16.mxu1 %v1174_v16  ;;  %v1210_v61 = vpack.c.bf16 %v831_v60, %v830_v59  ;;  %v833_v63 = vld [vmem:[%s1800_s4 + $0xa8] sm:$0xff]  ;;  %v834_v1 = vld [vmem:[%s1800_s4 + $0xb0] sm:$0xff]  ;;  %v835_v2 = vld [vmem:[%s1800_s4 + $0xb8] sm:$0xff] }
   0xd   :  { %995 = vmatprep.mubr.msk.f32.mxu0 %vm40_vm0, %v1416_v17  ;;  %v1214_v0 = vpack.c.bf16 %v833_v63, %v832_v62  ;;  %v1218_v3 = vpack.c.bf16 %v835_v2, %v834_v1  ;;  %v836_v4 = vld [vmem:[%s1800_s4 + $0xc0] sm:$0xff]  ;;  %v838_v7 = vld [vmem:[%s1800_s4 + $0xd0] sm:$0xff]  ;;  %v839_v8 = vld [vmem:[%s1800_s4 + $0xd8] sm:$0xff] }
   0xe   :  { %v1226_v9 = vpack.c.bf16 %v839_v8, %v838_v7  ;;  %v840_v10 = vld [vmem:[%s1800_s4 + $0xe0] sm:$0xff]  ;;  %v841_v11 = vld [vmem:[%s1800_s4 + $0xe8] sm:$0xff]  ;;  %v842_v13 = vld [vmem:[%s1800_s4 + $0xf0] sm:$0xff] }
   0xf   :  { %1177 = vmatpush3.bf16.msra.mxu1 %v1174_v16  ;;  %v1230_v12 = vpack.c.bf16 %v841_v11, %v840_v10  ;;  %v843_v14 = vld [vmem:[%s1800_s4 + $0xf8] sm:$0xff]  ;;  %v1321_v16 = vmov 0.0|0.0   ;;  %v541_v18 = vld [vmem:[%s1802_s5 + $0x88] sm:$0xff]  ;;  %v556_v23 = vld [vmem:[%s1802_s5 + $0x100] sm:$0xff] }
  0x10   :  { %996 = vmatmul.mubr.msk.f32.gmra.mrb[2].mxu0 %vm40_vm0, %v1431_v20  ;;  %1179 = vmatprep.subr.bf16.mxu1 %v1178_v21  ;;  %v543_v31 = vld [vmem:[%s1802_s5 + $0x98] sm:$0xff]  ;;  %v558_v32 = vld [vmem:[%s1802_s5 + $0x110] sm:$0xff]  ;;  %v564_v60 = vld [vmem:[%s1802_s5 + $0x140] sm:$0xff] }
  0x11   :  { %1044 = vmatprep.mubr.msk.f32.mxu0 %vm40_vm0, %v36_v5  ;;  %v837_v5 = vld [vmem:[%s1800_s4 + $0xc8] sm:$0xff]  ;;  %v531_v55 = vld [vmem:[%s1802_s5 + $0x38] sm:$0xff]  ;;  %v532_v62 = vld [vmem:[%s1802_s5 + $0x40] sm:$0xff] }
  0x12   :  { %v1222_v6 = vpack.c.bf16 %v837_v5, %v836_v4  ;;  %v550_v2 = vld [vmem:[%s1802_s5 + $0xd0] sm:$0xff]  ;;  %v535_v8 = vld [vmem:[%s1802_s5 + $0x58] sm:$0xff]  ;;  %v552_v11 = vld [vmem:[%s1802_s5 + $0xe0] sm:$0xff] }
  0x13   :  { %1181 = vmatpush3.bf16.msra.mxu1 %v1178_v21  ;;  %v525_v21 = vld [vmem:[%s1802_s5 + $0x8] sm:$0xff]  ;;  %v566_v4 = vld [vmem:[%s1802_s5 + $0x150] sm:$0xff] }
  0x14   :  { %1183 = vmatprep.subr.bf16.mxu1 %v1182_v24  ;;  %v534_v7 = vld [vmem:[%s1802_s5 + $0x50] sm:$0xff] }
  0x15   :  { %v1260_v10 = vpack.c.bf16 %v535_v8, %v534_v7 }
  0x17   :  { %1185 = vmatpush3.bf16.msra.mxu1 %v1182_v24  ;;  %v557_v24 = vld [vmem:[%s1802_s5 + $0x108] sm:$0xff] }
  0x18   :  { %1187 = vmatprep.subr.bf16.mxu1 %v1186_v27  ;;  %v1271_v26 = vpack.c.bf16 %v557_v24, %v556_v23  ;;  %v570_v23 = vld [vmem:[%s1802_s5 + $0x170] sm:$0xff] }
  0x1b   :  { %1189 = vmatpush3.bf16.msra.mxu1 %v1186_v27 }
  0x1c   :  { %1191 = vmatprep.subr.bf16.mxu1 %v1190_v30 }
  0x1f   :  { %1193 = vmatpush3.bf16.msra.mxu1 %v1190_v30  ;;  %v542_v30 = vld [vmem:[%s1802_s5 + $0x90] sm:$0xff] }
  0x20   :  { %1195 = vmatprep.subr.bf16.mxu1 %v1194_v33 }
  0x23   :  { %1197 = vmatpush3.bf16.msra.mxu1 %v1194_v33  ;;  %v1242_v33 = vpack.c.bf16 %v543_v31, %v542_v30  ;;  %v845_v31 = vld [vmem:[%s1801_s3 + $0x28] sm:$0xff] }
  0xdf   :  { %v994_v34 = vpop.f32.mrb[0].mxu0 }
  0xe0   :  { %v119_v35 = vpop.f32.mrb[1].mxu0 }
  0xe1   :  { %1030 = vmatprep.mubr.f32.mxu1 %v119_v35  ;;  %v526_v35 = vld [vmem:[%s1802_s5 + $0x10] sm:$0xff] }
  0xe2   :  { %1031 = vmatmul.mubr.f32.vlgmr.msra.gmra.mrb[0].mxu1 %v994_v34  ;;  %v559_v34 = vld [vmem:[%s1802_s5 + $0x118] sm:$0xff] }
  0xe3   :  { %v997_v36 = vpop.f32.mrb[2].mxu0 }
  0xe4   :  { %v129_v37 = vpop.f32.mrb[3].mxu0 }
  0xe5   :  { %1033 = vmatprep.mubr.f32.mxu1 %v129_v37  ;;  %v1274_v37 = vpack.c.bf16 %v559_v34, %v558_v32  ;;  %v844_v32 = vld [vmem:[%s1801_s3 + $0x20] sm:$0xff] }
  0xe6   :  { %1034 = vmatmul.mubr.f32.gmra.mrb[2].mxu1 %v997_v36  ;;  %v527_v36 = vld [vmem:[%s1802_s5 + $0x18] sm:$0xff] }
 0x1b5   :  { %v1032_v40 = vpop.f32.mrb[0].mxu1 }
 0x1b6   :  { %v230_v41 = vadd.f32 %v1032_v40, %v155_v38  ;;  %v224_v42 = vpop.f32.mrb[1].mxu1  ;;  %v1244_v38 = vpack.c.bf16 %v527_v36, %v526_v35  ;;  %v545_v40 = vld [vmem:[%s1802_s5 + $0xa8] sm:$0xff] }
 0x1b7   :  { %v225_v43 = vadd.f32 %v224_v42, %v154_v39  ;;  %v544_v39 = vld [vmem:[%s1802_s5 + $0xa0] sm:$0xff]  ;;  %v444_v35 = vld [vmem:[%s1803_s2 + $0x8] sm:$0xff] }
 0x1b8   :  { %v244_v45 = vmax.f32 %v230_v41, 0.0  ;;  %v1246_v41 = vpack.c.bf16 %v545_v40, %v544_v39  ;;  %v560_v42 = vld [vmem:[%s1802_s5 + $0x120] sm:$0xff]  ;;  %v849_v36 = vld [vmem:[%s1803_s2 + $0x28] sm:$0xff] }
 0x1b9   :  { %v243_v47 = vmax.f32 %v225_v43, 0.0  ;;  %v1035_v48 = vpop.f32.mrb[2].mxu1  ;;  %v561_v43 = vld [vmem:[%s1802_s5 + $0x128] sm:$0xff]  ;;  %v443_v40 = vld [vmem:[%s1803_s2] sm:$0xff] }
 0x1ba   :  { %v240_v49 = vadd.f32 %v1035_v48, %v157_v44  ;;  %v234_v50 = vpop.f32.mrb[3].mxu1  ;;  %v1277_v44 = vpack.c.bf16 %v561_v43, %v560_v42  ;;  %v546_v48 = vld [vmem:[%s1802_s5 + $0xb0] sm:$0xff]  ;;  %v848_v43 = vld [vmem:[%s1803_s2 + $0x20] sm:$0xff] }
 0x1bb   :  { %v1198_v51 = vpack.c.bf16 %v244_v45, %v243_v47  ;;  %v235_v52 = vadd.f32 %v234_v50, %v156_v46  ;;  %v528_v45 = vld [vmem:[%s1802_s5 + $0x20] sm:$0xff]  ;;  %v529_v46 = vld [vmem:[%s1802_s5 + $0x28] sm:$0xff] }
 0x1bc   :  { %v246_v53 = vmax.f32 %v240_v49, 0.0  ;;  %v1248_v47 = vpack.c.bf16 %v529_v46, %v528_v45  ;;  %v547_v49 = vld [vmem:[%s1802_s5 + $0xb8] sm:$0xff]  ;;  %v846_v45 = vld [vmem:[%s1801_s3 + $0x30] sm:$0xff] }
 0x1bd   :  { %v245_v56 = vmax.f32 %v235_v52, 0.0  ;;  %1199 = vmatprep.subr.bf16.mxu0 %v1198_v51  ;;  %v1250_v50 = vpack.c.bf16 %v547_v49, %v546_v48  ;;  %v563_v52 = vld [vmem:[%s1802_s5 + $0x138] sm:$0xff] }
 0x1be   :  { %1201 = vmatpush3.bf16.msra.mxu0 %v1198_v51  ;;  %v562_v51 = vld [vmem:[%s1802_s5 + $0x130] sm:$0xff] }
 0x1bf   :  { %v1202_v57 = vpack.c.bf16 %v246_v53, %v245_v56  ;;  %v530_v53 = vld [vmem:[%s1802_s5 + $0x30] sm:$0xff]  ;;  %v1280_v54 = vpack.c.bf16 %v563_v52, %v562_v51 }
 0x1c0   :  { %v1252_v56 = vpack.c.bf16 %v531_v55, %v530_v53 }
 0x1c1   :  { %1203 = vmatprep.subr.bf16.mxu0 %v1202_v57 }
 0x1c2   :  { %1205 = vmatpush3.bf16.msra.mxu0 %v1202_v57  ;;  %v548_v57 = vld [vmem:[%s1802_s5 + $0xc0] sm:$0xff] }
 0x1c3   :  { %1207 = vmatprep.subr.bf16.mxu0 %v1206_v58 }
 0x1c5   :  { %1045 = vmatmul.mubr.msk.f32.vlgmr.msra.gmra.mrb[4].mxu0 %vm40_vm0, %v1411_v15  ;;  %v1234_v15 = vpack.c.bf16 %v843_v14, %v842_v13  ;;  %v568_v13 = vld [vmem:[%s1802_s5 + $0x160] sm:$0xff] }
 0x1c6   :  { %1047 = vmatprep.mubr.msk.f32.mxu0 %vm40_vm0, %v1416_v17  ;;  %1209 = vmatpush3.bf16.msra.mxu0 %v1206_v58  ;;  %v540_v17 = vld [vmem:[%s1802_s5 + $0x80] sm:$0xff]  ;;  %v549_v58 = vld [vmem:[%s1802_s5 + $0xc8] sm:$0xff] }
 0x1c7   :  { %1211 = vmatprep.subr.bf16.mxu0 %v1210_v61  ;;  %v1238_v19 = vpack.c.bf16 %v541_v18, %v540_v17  ;;  %v1254_v59 = vpack.c.bf16 %v549_v58, %v548_v57  ;;  %v536_v17 = vld [vmem:[%s1802_s5 + $0x60] sm:$0xff]  ;;  %v537_v18 = vld [vmem:[%s1802_s5 + $0x68] sm:$0xff]  ;;  %v851_v57 = vld [vmem:[%s1803_s2 + $0x38] sm:$0xff] }
 0x1c8   :  { %v855_v58 = vld [vmem:[%s1803_s2 + $0x58] sm:$0xff] }
 0x1c9   :  { %1048 = vmatmul.mubr.msk.f32.gmra.mrb[6].mxu0 %vm40_vm0, %v1431_v20  ;;  %v524_v20 = vld [vmem:[%s1802_s5] sm:$0xff]  ;;  %1239 = vmatprep.subr.bf16.mxu1 %v1238_v19 }
 0x1ca   :  { %1213 = vmatpush3.bf16.msra.mxu0 %v1210_v61  ;;  %v1240_v22 = vpack.c.bf16 %v525_v21, %v524_v20  ;;  %v565_v61 = vld [vmem:[%s1802_s5 + $0x148] sm:$0xff]  ;;  %v1264_v20 = vpack.c.bf16 %v537_v18, %v536_v17  ;;  %v554_v21 = vld [vmem:[%s1802_s5 + $0xf0] sm:$0xff] }
 0x1cb   :  { %1215 = vmatprep.subr.bf16.mxu0 %v1214_v0  ;;  %v1283_v63 = vpack.c.bf16 %v565_v61, %v564_v60  ;;  %v445_v61 = vld [vmem:[%s1803_s2 + $0x10] sm:$0xff] }
 0x1cc   :  { %1241 = vmatpush3.bf16.msra.mxu1 %v1240_v22  ;;  %v555_v22 = vld [vmem:[%s1802_s5 + $0xf8] sm:$0xff] }
 0x1cd   :  { %1243 = vmatprep.subr.bf16.mxu1 %v1242_v33  ;;  %v1266_v24 = vpack.c.bf16 %v555_v22, %v554_v21 }
 0x1ce   :  { %1217 = vmatpush3.bf16.msra.mxu0 %v1214_v0  ;;  %v533_v0 = vld [vmem:[%s1802_s5 + $0x48] sm:$0xff] }
 0x1cf   :  { %1219 = vmatprep.subr.bf16.mxu0 %v1218_v3  ;;  %v1256_v1 = vpack.c.bf16 %v533_v0, %v532_v62 }
 0x1d0   :  { %1245 = vmatpush3.bf16.msra.mxu1 %v1244_v38  ;;  %v853_v38 = vld [vmem:[%s1803_s2 + $0x48] sm:$0xff] }
 0x1d1   :  { %1247 = vmatprep.subr.bf16.mxu1 %v1246_v41  ;;  %v847_v41 = vld [vmem:[%s1801_s3 + $0x38] sm:$0xff] }
 0x1d2   :  { %1221 = vmatpush3.bf16.msra.mxu0 %v1218_v3  ;;  %v551_v3 = vld [vmem:[%s1802_s5 + $0xd8] sm:$0xff] }
 0x1d3   :  { %1223 = vmatprep.subr.bf16.mxu0 %v1222_v6  ;;  %v1258_v5 = vpack.c.bf16 %v551_v3, %v550_v2  ;;  %v850_v2 = vld [vmem:[%s1803_s2 + $0x30] sm:$0xff] }
 0x1d4   :  { %1249 = vmatpush3.bf16.msra.mxu1 %v1248_v47  ;;  %v854_v3 = vld [vmem:[%s1803_s2 + $0x50] sm:$0xff] }
 0x1d5   :  { %1251 = vmatprep.subr.bf16.mxu1 %v1250_v50 }
 0x1d6   :  { %1225 = vmatpush3.bf16.msra.mxu0 %v1222_v6  ;;  %v567_v6 = vld [vmem:[%s1802_s5 + $0x158] sm:$0xff] }
 0x1d7   :  { %1227 = vmatprep.subr.bf16.mxu0 %v1226_v9 }
 0x1d8   :  { %1253 = vmatpush3.bf16.msra.mxu1 %v1252_v56  ;;  %v446_v56 = vld [vmem:[%s1803_s2 + $0x18] sm:$0xff] }
 0x1d9   :  { %1255 = vmatprep.subr.bf16.mxu1 %v1254_v59 }
 0x1da   :  { %1229 = vmatpush3.bf16.msra.mxu0 %v1226_v9  ;;  %v1286_v9 = vpack.c.bf16 %v567_v6, %v566_v4 }
 0x1db   :  { %1231 = vmatprep.subr.bf16.mxu0 %v1230_v12 }
 0x1dc   :  { %1257 = vmatpush3.bf16.msra.mxu1 %v1256_v1 }
 0x1dd   :  { %1259 = vmatprep.subr.bf16.mxu1 %v1258_v5 }
 0x1de   :  { %1233 = vmatpush3.bf16.msra.mxu0 %v1230_v12  ;;  %v553_v12 = vld [vmem:[%s1802_s5 + $0xe8] sm:$0xff] }
 0x1df   :  { %1235 = vmatprep.subr.bf16.mxu0 %v1234_v15  ;;  %v1262_v14 = vpack.c.bf16 %v553_v12, %v552_v11 }
 0x1e0   :  { %1261 = vmatpush3.bf16.msra.mxu1 %v1260_v10 }
 0x1e1   :  { %1263 = vmatprep.subr.bf16.mxu1 %v1262_v14 }
 0x1e2   :  { %1237 = vmatpush3.bf16.msra.mxu0 %v1234_v15  ;;  %v569_v15 = vld [vmem:[%s1802_s5 + $0x168] sm:$0xff] }
 0x1e3   :  { %1270 = vmatprep.subr.bf16.mxu0 %v1321_v16  ;;  %v1289_v19 = vpack.c.bf16 %v569_v15, %v568_v13 }
 0x1e4   :  { %1265 = vmatpush3.bf16.msra.mxu1 %v1264_v20 }
 0x1e5   :  { %1267 = vmatprep.subr.bf16.mxu1 %v1266_v24 }
 0x298   :  { %v1046_v25 = vpop.f32.mrb[4].mxu0 }
 0x299   :  { %v313_v27 = vpop.f32.mrb[5].mxu0 }
 0x29a   :  { %1082 = vmatprep.mubr.f32.mxu0 %v313_v27  ;;  %v539_v27 = vld [vmem:[%s1802_s5 + $0x78] sm:$0xff] }
 0x29b   :  { %1083 = vmatmul.mubr.f32.vlgmr.msra.gmra.mrb[8].mxu0 %v1046_v25  ;;  %v571_v25 = vld [vmem:[%s1802_s5 + $0x178] sm:$0xff] }
 0x29c   :  { %v1049_v28 = vpop.f32.mrb[6].mxu0  ;;  %1272 = vmatpush3.bf16.msra.mxu0 %v1271_v26  ;;  %v538_v26 = vld [vmem:[%s1802_s5 + $0x70] sm:$0xff] }
 0x29d   :  { %v323_v29 = vpop.f32.mrb[7].mxu0  ;;  %1273 = vmatprep.subr.bf16.mxu0 %v1321_v16  ;;  %v1268_v30 = vpack.c.bf16 %v539_v27, %v538_v26 }
 0x29e   :  { %1085 = vmatprep.mubr.f32.mxu0 %v323_v29  ;;  %v1292_v29 = vpack.c.bf16 %v571_v25, %v570_v23 }
 0x29f   :  { %1086 = vmatmul.mubr.f32.gmra.mrb[10].mxu0 %v1049_v28  ;;  %v1323_v28 = vmov 0.0   ;;  %1269 = vmatpush3.bf16.msra.mxu1 %v1268_v30 }
 0x2a0   :  { %1275 = vmatpush3.bf16.msra.mxu0 %v1274_v37  ;;  %1120 = vmatprep.mubr.msk.f32.mxu0 %vm1322_vm1, %v1323_v28 }
 0x2a1   :  { %1276 = vmatprep.subr.bf16.mxu0 %v1321_v16  ;;  %1294 = vmatprep.subr.bf16.mxu1 %v1321_v16 }
 0x2a4   :  { %1278 = vmatpush3.bf16.msra.mxu0 %v1277_v44  ;;  %v852_v44 = vld [vmem:[%s1803_s2 + $0x40] sm:$0xff] }
 0x2a5   :  { %1279 = vmatprep.subr.bf16.mxu0 %v1321_v16 }
 0x2a8   :  { %1281 = vmatpush3.bf16.msra.mxu0 %v1280_v54 }
 0x2a9   :  { %1282 = vmatprep.subr.bf16.mxu0 %v1321_v16 }
 0x2ac   :  { %1284 = vmatpush3.bf16.msra.mxu0 %v1283_v63 }
 0x2ad   :  { %1285 = vmatprep.subr.bf16.mxu0 %v1321_v16 }
 0x2b0   :  { %1287 = vmatpush3.bf16.msra.mxu0 %v1286_v9 }
 0x2b1   :  { %1288 = vmatprep.subr.bf16.mxu0 %v1321_v16 }
 0x2b4   :  { %1290 = vmatpush3.bf16.msra.mxu0 %v1289_v19 }
 0x2b5   :  { %1291 = vmatprep.subr.bf16.mxu0 %v1321_v16 }
 0x2b8   :  { %1293 = vmatpush3.bf16.msra.mxu0 %v1292_v29 }
 0x36e   :  { %v1084_v33 = vpop.f32.mrb[8].mxu0 }
 0x36f   :  { %v426_v34 = vadd.f32 %v1084_v33, %v845_v31  ;;  %v420_v37 = vpop.f32.mrb[9].mxu0 }
 0x370   :  { %v421_v39 = vadd.f32 %v844_v32, %v420_v37 }
 0x371   :  { %v440_v42 = vmax.f32 %v426_v34, 0.0 }
 0x372   :  { %v439_v46 = vmax.f32 %v421_v39, 0.0  ;;  %v1087_v47 = vpop.f32.mrb[10].mxu0 }
 0x373   :  { %v448_v48 = vadd.f32 %v444_v35, %v440_v42  ;;  %v471_v49 = vadd.f32 %v849_v36, %v440_v42  ;;  %v494_v50 = vadd.f32 %v853_v38, %v440_v42  ;;  %v436_v51 = vadd.f32 %v1087_v47, %v847_v41  ;;  %v430_v52 = vpop.f32.mrb[11].mxu0 }
 0x374   :  { %v447_v53 = vadd.f32 %v443_v40, %v439_v46  ;;  %v470_v54 = vadd.f32 %v848_v43, %v439_v46  ;;  %v493_v55 = vadd.f32 %v852_v44, %v439_v46  ;;  %v431_v59 = vadd.f32 %v846_v45, %v430_v52  ;;  %v720_v45 = vld [vmem:[%s1804_s7] sm:$0xff]  ;;  %v721_v46 = vld [vmem:[%s1804_s7 + $0x8] sm:$0xff] }
 0x375   :  { %v442_v60 = vmax.f32 %v436_v51, 0.0 }
 0x376   :  { %v451_v62 = vmax.f32 %v447_v53, %v448_v48  ;;  %v474_v63 = vmax.f32 %v470_v54, %v471_v49  ;;  %v497_v0 = vmax.f32 %v493_v55, %v494_v50  ;;  %v441_v1 = vmax.f32 %v431_v59, 0.0 }
 0x377   :  { %v450_v4 = vadd.f32 %v446_v56, %v442_v60  ;;  %v473_v5 = vadd.f32 %v851_v57, %v442_v60  ;;  %v496_v6 = vadd.f32 %v855_v58, %v442_v60  ;;  %v1295_v54 = vpack.c.bf16 %v721_v46, %v720_v45  ;;  %v722_v57 = vld [vmem:[%s1804_s7 + $0x10] sm:$0xff]  ;;  %v723_v58 = vld [vmem:[%s1804_s7 + $0x18] sm:$0xff]  ;;  %v724_v60 = vld [vmem:[%s1804_s7 + $0x20] sm:$0xff] }
 0x378   :  { %v452_v7 = vrot.slane %v451_v62, 4  ;;  %v475_v8 = vrot.slane %v474_v63, 4  ;;  %v498_v9 = vrot.slane %v497_v0, 4  ;;  %v449_v10 = vadd.f32 %v445_v61, %v441_v1  ;;  %v725_v61 = vld [vmem:[%s1804_s7 + $0x28] sm:$0xff] }
 0x379   :  { %v472_v11 = vadd.f32 %v850_v2, %v441_v1  ;;  %v495_v12 = vadd.f32 %v854_v3, %v441_v1  ;;  %v1298_v59 = vpack.c.bf16 %v723_v58, %v722_v57  ;;  %v728_v1 = vld [vmem:[%s1804_s7 + $0x40] sm:$0xff]  ;;  %v729_v2 = vld [vmem:[%s1804_s7 + $0x48] sm:$0xff] }
 0x37a   :  { %v453_v13 = vmax.f32 %v451_v62, %v452_v7  ;;  %v476_v14 = vmax.f32 %v474_v63, %v475_v8  ;;  %v499_v15 = vmax.f32 %v497_v0, %v498_v9  ;;  %v458_v17 = vmax.f32 %v449_v10, %v450_v4  ;;  %v726_v63 = vld [vmem:[%s1804_s7 + $0x30] sm:$0xff]  ;;  %v732_v7 = vld [vmem:[%s1804_s7 + $0x60] sm:$0xff]  ;;  %v733_v8 = vld [vmem:[%s1804_s7 + $0x68] sm:$0xff] }
 0x37b   :  { %v481_v18 = vmax.f32 %v472_v11, %v473_v5  ;;  %v504_v19 = vmax.f32 %v495_v12, %v496_v6  ;;  %v1301_v62 = vpack.c.bf16 %v725_v61, %v724_v60  ;;  %v1307_v3 = vpack.c.bf16 %v729_v2, %v728_v1  ;;  %v730_v4 = vld [vmem:[%s1804_s7 + $0x50] sm:$0xff]  ;;  %v731_v5 = vld [vmem:[%s1804_s7 + $0x58] sm:$0xff] }
 0x37c   :  { %v454_v20 = vrot.slane %v453_v13, 2  ;;  %v500_v21 = vrot.slane %v499_v15, 2  ;;  %v459_v22 = vrot.slane %v458_v17, 4  ;;  %v477_v23 = vrot.slane %v476_v14, 2  ;;  %v734_v10 = vld [vmem:[%s1804_s7 + $0x70] sm:$0xff]  ;;  %v735_v11 = vld [vmem:[%s1804_s7 + $0x78] sm:$0xff] }
 0x37d   :  { %v482_v24 = vrot.slane %v481_v18, 4  ;;  %v505_v25 = vrot.slane %v504_v19, 4  ;;  %v1310_v6 = vpack.c.bf16 %v731_v5, %v730_v4  ;;  %v1313_v9 = vpack.c.bf16 %v733_v8, %v732_v7 }
 0x37e   :  { %v455_v26 = vmax.f32 %v453_v13, %v454_v20  ;;  %v460_v27 = vmax.f32 %v458_v17, %v459_v22  ;;  %v501_v29 = vmax.f32 %v499_v15, %v500_v21  ;;  %v478_v32 = vmax.f32 %v476_v14, %v477_v23  ;;  %v856_v17 = vld [vmem:[%s1806_s6] ss:$0 sm:$0xff] }
 0x37f   :  { %v483_v30 = vmax.f32 %v481_v18, %v482_v24  ;;  %v506_v31 = vmax.f32 %v504_v19, %v505_v25  ;;  %v1316_v12 = vpack.c.bf16 %v735_v11, %v734_v10  ;;  %v857_v22 = vld [vmem:[%s1807_s8] ss:$0 sm:$0xff] }
 0x380   :  { %v461_v33 = vrot.slane %v460_v27, 2  ;;  %v456_v37 = vrot.slane %v455_v26, 1  ;;  %v479_v39 = vrot.slane %v478_v32, 1  ;;  %v502_v41 = vrot.slane %v501_v29, 1 }
 0x381   :  { %v507_v34 = vrot.slane %v506_v31, 2  ;;  %v484_v35 = vrot.slane %v483_v30, 2 }
 0x382   :  { %v462_v36 = vmax.f32 %v460_v27, %v461_v33  ;;  %v457_v47 = vmax.f32 %v455_v26, %v456_v37  ;;  %v480_v49 = vmax.f32 %v478_v32, %v479_v39  ;;  %v503_v51 = vmax.f32 %v501_v29, %v502_v41 }
 0x383   :  { %v508_v38 = vmax.f32 %v506_v31, %v507_v34  ;;  %v485_v40 = vmax.f32 %v483_v30, %v484_v35 }
 0x384   :  { %v463_v42 = vrot.slane %v462_v36, 1 }
 0x385   :  { %v486_v43 = vrot.slane %v485_v40, 1  ;;  %v509_v44 = vrot.slane %v508_v38, 1 }
 0x386   :  { %v464_v48 = vmax.f32 %v462_v36, %v463_v42 }
 0x387   :  { %v487_v50 = vmax.f32 %v485_v40, %v486_v43  ;;  %v510_v52 = vmax.f32 %v508_v38, %v509_v44 }
 0x388   :  { %v514_v53 = vsel %vm513_vm2, %v464_v48, %v457_v47 }
 0x389   :  { %v518_v55 = vsel %vm513_vm2, %v487_v50, %v480_v49  ;;  %v522_v56 = vsel %vm513_vm2, %v510_v52, %v503_v51  ;;  %858 = vst [vmem:[%s1805_s9 + $0x2] sm:$0x3] %v514_v53 }
 0x38a   :  { %643 = vmatprep.mubr.f32.mxu1 %v518_v55  ;;  %1121 = vmatmul.mubr.f32.vlgmr.msra.gmra.mrb[12].mxu0 %v522_v56 }
 0x38b   :  { %644 = vmatmul.mubr.f32.vlgmr.msra.gmra.mrb[4].mxu1 %v514_v53 }
 0x38c   :  { %1296 = vmatpush3.bf16.msra.mxu1 %v1295_v54  ;;  %1155 = vmatprep.mubr.msk.f32.mxu1 %vm1322_vm1, %v1323_v28  ;;  %v727_v28 = vld [vmem:[%s1804_s7 + $0x38] sm:$0xff] }
 0x38d   :  { %1297 = vmatprep.subr.bf16.mxu1 %v1321_v16  ;;  %v1304_v0 = vpack.c.bf16 %v727_v28, %v726_v63 }
 0x390   :  { %1299 = vmatpush3.bf16.msra.mxu1 %v1298_v59 }
 0x391   :  { %1300 = vmatprep.subr.bf16.mxu1 %v1321_v16 }
 0x394   :  { %1302 = vmatpush3.bf16.msra.mxu1 %v1301_v62 }
 0x395   :  { %1303 = vmatprep.subr.bf16.mxu1 %v1321_v16 }
 0x398   :  { %1305 = vmatpush3.bf16.msra.mxu1 %v1304_v0 }
 0x399   :  { %1306 = vmatprep.subr.bf16.mxu1 %v1321_v16 }
 0x39c   :  { %1308 = vmatpush3.bf16.msra.mxu1 %v1307_v3 }
 0x39d   :  { %1309 = vmatprep.subr.bf16.mxu1 %v1321_v16 }
 0x3a0   :  { %1311 = vmatpush3.bf16.msra.mxu1 %v1310_v6 }
 0x3a1   :  { %1312 = vmatprep.subr.bf16.mxu1 %v1321_v16 }
 0x3a4   :  { %1314 = vmatpush3.bf16.msra.mxu1 %v1313_v9 }
 0x3a5   :  { %1315 = vmatprep.subr.bf16.mxu1 %v1321_v16 }
 0x3a8   :  { %1317 = vmatpush3.bf16.msra.mxu1 %v1316_v12 }
 0x45d   :  { %v715_v13 = vpop.f32.mrb[12].mxu0 }
 0x45e   :  { %v947_v14 = vpop.f32.mrb[4].mxu1  ;;  %v1122_v15 = vpop.f32.mrb[13].mxu0 }
 0x45f   :  { %v948_v18 = vpop.f32.mrb[5].mxu1 }
 0x460   :  { %v949_v19 = vadd.f32 %v948_v18, %v947_v14 }
 0x462   :  { %v646_v16 = vadd.f32 %v949_v19, %v856_v17 }
 0x464   :  { %v716_v20 = vadd.f32 %v715_v13, %v646_v16 }
 0x466   :  { %v719_v21 = vmax.f32 %v716_v20, 0.0 }
 0x468   :  { %1156 = vmatmul.mubr.f32.vlgmr.msra.gmra.mrb[6].mxu1 %v719_v21 }
 0x53b   :  { %v809_v23 = vpop.f32.mrb[6].mxu1 }
 0x53c   :  { %v810_v24 = vadd.f32 %v857_v22, %v809_v23  ;;  %v1157_v25 = vpop.f32.mrb[7].mxu1 }
 0x53e   :  { %813 = vst [vmem:[%s1805_s9] sm:$0x3] %v810_v24 }

</bundles_post_ra>
